<compile_context>
chip_gen: v6e
topology: v6e:2x2x1
jax: 0.10.0
libtpu: 0.0.40
codegen_flags: <defaults>
</compile_context>

<pallas_src>
import functools

import jax
import jax.numpy as jnp
from jax.experimental import pallas as pl
from jax.experimental.pallas import tpu as pltpu

LN_EPS = 1e-5  # torch.nn.LayerNorm default


def _tpu_vmem_and_cores():
    """Best-effort (per-TensorCore VMEM bytes, TensorCores sharing the grid)."""
    vmem = None
    try:
        info = pltpu.get_tpu_info()
        v = getattr(info, "vmem_capacity_bytes", None)
        vmem = int(v) if v else None
    except Exception:
        vmem = None
    kind = ""
    try:
        kind = jax.devices()[0].device_kind.lower()
    except Exception:
        pass
    cores = 2 if ("v7" in kind or "7x" in kind) else 1
    if vmem is None:
        if ("v5" in kind) or ("v6" in kind):
            vmem = 128 << 20          # v5e / v6e: 128 MiB per TensorCore
        else:
            vmem = 64 << 20           # v7x (and conservative default)
    return vmem, cores


def _patch_merge_kernel(x_ref, wt_ref, wb_ref, b_ref, o_ref, *,
                        slab_rows, n_slabs):
    # x_ref : (t, 2, Wo, 2C)   h2=0 slab holds [x0|x2], h2=1 slab holds [x1|x3]
    # wt_ref: (2C, OutP)       gamma-folded weight rows for [x0|x2] (MXU dtype)
    # wb_ref: (2C, OutP)       gamma-folded weight rows for [x1|x3] (MXU dtype)
    # b_ref : (1, OutP) f32    beta @ W^T
    # o_ref : (t, Wo, OutP)
    _, _, wo, c2 = x_ref.shape
    out_p = o_ref.shape[-1]
    inv_n = 1.0 / (2.0 * c2)

    wt = wt_ref[...]
    wb = wb_ref[...]
    bias = b_ref[...]
    mdt = wt.dtype

    def process(start):
        xs = x_ref[pl.ds(start, slab_rows)]            # (s, 2, Wo, 2C)
        xt = xs[:, 0].astype(jnp.float32)              # (s, Wo, 2C)  [x0|x2]
        xb = xs[:, 1].astype(jnp.float32)              # (s, Wo, 2C)  [x1|x3]

        # Centered two-pass LayerNorm statistics in f32 (torch numerics).
        mean = (jnp.sum(xt, axis=-1, keepdims=True)
                + jnp.sum(xb, axis=-1, keepdims=True)) * inv_n
        xct = xt - mean
        xcb = xb - mean
        var = (jnp.sum(xct * xct, axis=-1, keepdims=True)
               + jnp.sum(xcb * xcb, axis=-1, keepdims=True)) * inv_n
        rstd = jax.lax.rsqrt(var + LN_EPS)

        xnt = (xct * rstd).reshape(slab_rows * wo, c2).astype(mdt)
        xnb = (xcb * rstd).reshape(slab_rows * wo, c2).astype(mdt)

        acc = jnp.dot(xnt, wt, preferred_element_type=jnp.float32)
        acc = acc + jnp.dot(xnb, wb, preferred_element_type=jnp.float32)
        acc = acc + bias                               # folded LN bias, f32
        o_ref[pl.ds(start, slab_rows)] = acc.reshape(
            slab_rows, wo, out_p).astype(o_ref.dtype)

    if n_slabs == 1:
        process(0)
    else:
        # Sub-slab loop keeps the f32 LN working set small while the HBM block
        # (and therefore per-step DMA) stays large.
        def body(s, carry):
            process(s * slab_rows)
            return carry
        jax.lax.fori_loop(0, n_slabs, body, 0, unroll=(n_slabs <= 8))


def patch_merging2d(x, gamma, beta, weight, *, tokens_per_tile=None,
                    slab_tokens=None, mxu_dtype=jnp.bfloat16,
                    out_dtype=None, single_buffer_consts=None):
    """PatchMerging2D forward.

    x      : (B, H, W, C) channels-last (bf16 input recommended when the
             surrounding network tolerates it — this op is HBM-bound).
    gamma  : (4C,)   LayerNorm weight
    beta   : (4C,)   LayerNorm bias
    weight : (out_dim, 4C)  nn.Linear weight (bias-free, torch layout)

    mxu_dtype : MXU operand dtype (bf16 default; float32 escape hatch).
    out_dtype : output dtype (defaults to x.dtype); bf16 halves writeback bytes.
    """
    B, H, W, C = x.shape
    assert weight.shape[1] == 4 * C, (weight.shape, C)
    ph, pw = H % 2, W % 2
    if ph or pw:  # torch F.pad semantics: pad at the end (odd case only)
        x = jnp.pad(x, ((0, 0), (0, ph), (0, pw), (0, 0)))
        H, W = H + ph, W + pw
    Ho, Wo = H // 2, W // 2
    R = B * Ho
    C2, C4 = 2 * C, 4 * C
    out_dim = weight.shape[0]
    out_dtype = x.dtype if out_dtype is None else out_dtype

    # Lane handling: write native width when out_dim >= 128 (masked stores are
    # cheap here; padding + the wrapper slice would cost an extra HBM pass).
    # Only pad up to one lane group when out_dim < 128.
    out_p = 128 if out_dim < 128 else out_dim

    # Free view: (B*Ho, 2, Wo, 2C).  h2=0 row = [x0|x2], h2=1 row = [x1|x3].
    x4 = x.reshape(R, 2, Wo, C2)

    # Fold the LayerNorm affine into the reduction weight and permute rows from
    # torch concat order [x0,x1,x2,x3] to memory order [x0,x2 | x1,x3].
    # (With static weights under jit, this prep constant-folds; eager callers
    # that loop over many invocations should hoist/cache it.)
    wt_f = weight.astype(jnp.float32).T                    # (4C, out_dim)
    wf = gamma.astype(jnp.float32)[:, None] * wt_f         # gamma folded
    bias = beta.astype(jnp.float32) @ wt_f                 # (out_dim,)
    w_top = jnp.concatenate([wf[0:C], wf[2 * C:3 * C]], axis=0)      # [x0; x2]
    w_bot = jnp.concatenate([wf[C:2 * C], wf[3 * C:4 * C]], axis=0)  # [x1; x3]
    if out_p != out_dim:
        pad = out_p - out_dim
        w_top = jnp.pad(w_top, ((0, 0), (0, pad)))
        w_bot = jnp.pad(w_bot, ((0, 0), (0, pad)))
        bias = jnp.pad(bias, (0, pad))
    w_top = w_top.astype(mxu_dtype)
    w_bot = w_bot.astype(mxu_dtype)
    bias2 = bias.reshape(1, out_p)

    in_item = jnp.dtype(x.dtype).itemsize
    out_item = jnp.dtype(out_dtype).itemsize
    w_item = jnp.dtype(mxu_dtype).itemsize

    vmem_cap, num_cores = _tpu_vmem_and_cores()
    if tokens_per_tile is None:
        # 128 MiB parts (v5e/v6e) take larger per-step DMAs to amortize the
        # ~0.35 us per-step overhead; v7x keeps a smaller default.
        tokens_per_tile = 2048 if vmem_cap >= (96 << 20) else 1024

    # Row-tile selection: big DMA tiles, but >= 2 grid steps per TensorCore so
    # default double-buffering overlaps input DMA and output writeback.
    t_r = max(1, min(R, tokens_per_tile // max(1, Wo)))
    min_steps = 2 * num_cores
    if R >= min_steps:
        t_r = min(t_r, pl.cdiv(R, min_steps))

    # Sub-slab rows: bound the in-kernel f32 LN working set (~6 MiB) so it is
    # decoupled from the (large) DMA tile even at large C.
    f32_bytes_per_row = Wo * (16 * C4 + 4 * out_p) + 1
    if slab_tokens is not None:
        slab_rows = max(1, min(t_r, slab_tokens // max(1, Wo)))
    else:
        slab_rows = max(1, min(t_r, (6 << 20) // f32_bytes_per_row))
    t_r = max(slab_rows, (t_r // slab_rows) * slab_rows)   # keep t_r % slab == 0

    # Constant-index operands (weights / bias): single-buffer when large enough
    # for the duplicate to matter.  Size-gated so small shapes never depend on
    # pipeline_mode support; pass single_buffer_consts=False to force-disable.
    const_bytes = 2 * C2 * out_p * w_item + out_p * 4
    if single_buffer_consts is None:
        single_buffer_consts = const_bytes >= (2 << 20)
    n_const_buf = 1 if single_buffer_consts else 2
    const_kw = {"pipeline_mode": pl.Buffered(1)} if single_buffer_consts else {}

    def _vmem_est(t):
        x_blk = t * 2 * Wo * C2 * in_item              # input tile
        o_blk = t * Wo * out_p * out_item              # output tile
        slab_tmp = slab_rows * f32_bytes_per_row       # in-kernel f32 temps
        return (2 * (x_blk + o_blk) + n_const_buf * const_bytes
                + slab_tmp + (2 << 20))

    vmem_budget = max(32 << 20, vmem_cap - (16 << 20))  # gen-aware headroom
    while t_r > slab_rows and _vmem_est(t_r) > vmem_budget:
        t_r = max(slab_rows, ((t_r // 2) // slab_rows) * slab_rows)

    grid_n = pl.cdiv(R, t_r)
    n_slabs = t_r // slab_rows
    vmem_limit = int(min(vmem_cap, max(32 << 20, _vmem_est(t_r) + (4 << 20))))

    kernel = functools.partial(_patch_merge_kernel,
                               slab_rows=slab_rows, n_slabs=n_slabs)

    out3 = pl.pallas_call(
        kernel,
        out_shape=jax.ShapeDtypeStruct((R, Wo, out_p), out_dtype),
        grid_spec=pltpu.PrefetchScalarGridSpec(
            num_scalar_prefetch=0,
            grid=(grid_n,),
            in_specs=[
                pl.BlockSpec((t_r, 2, Wo, C2), lambda i: (i, 0, 0, 0)),
                pl.BlockSpec((C2, out_p), lambda i: (0, 0), **const_kw),
                pl.BlockSpec((C2, out_p), lambda i: (0, 0), **const_kw),
                pl.BlockSpec((1, out_p), lambda i: (0, 0), **const_kw),
            ],
            out_specs=pl.BlockSpec((t_r, Wo, out_p), lambda i: (i, 0, 0)),
        ),
        compiler_params=pltpu.CompilerParams(
            dimension_semantics=("parallel",),
            vmem_limit_bytes=vmem_limit,
        ),
    )(x4, w_top, w_bot, bias2)

    out = out3.reshape(B, Ho, Wo, out_p)
    if out_p != out_dim:           # only taken for out_dim < 128 (tiny slice)
        out = out[..., :out_dim]
    return out


def patch_merging2d_ref(x, gamma, beta, weight):
    """Pure-JAX f32 reference matching the PyTorch module."""
    B, H, W, C = x.shape
    if (H % 2) or (W % 2):
        x = jnp.pad(x, ((0, 0), (0, H % 2), (0, W % 2), (0, 0)))
    x0 = x[:, 0::2, 0::2, :]
    x1 = x[:, 1::2, 0::2, :]
    x2 = x[:, 0::2, 1::2, :]
    x3 = x[:, 1::2, 1::2, :]
    xm = jnp.concatenate([x0, x1, x2, x3], axis=-1).astype(jnp.float32)
    mean = jnp.mean(xm, axis=-1, keepdims=True)
    var = jnp.mean(jnp.square(xm - mean), axis=-1, keepdims=True)
    y = ((xm - mean) * jax.lax.rsqrt(var + LN_EPS)
         * gamma.astype(jnp.float32) + beta.astype(jnp.float32))
    return jnp.einsum("bhwc,oc->bhwo", y, weight.astype(jnp.float32))


if __name__ == "__main__":
    root = jax.random.PRNGKey(0)

    def make_case(key, B, H, W, dim, out_dim):
        k_x, k_w, k_g, k_b = jax.random.split(key, 4)
        x = jax.random.normal(k_x, (B, H, W, dim), dtype=jnp.float32)
        bound = 1.0 / (4.0 * dim) ** 0.5
        weight = jax.random.uniform(k_w, (out_dim, 4 * dim),
                                    minval=-bound, maxval=bound,
                                    dtype=jnp.float32)
        gamma = jax.random.uniform(k_g, (4 * dim,), minval=0.5, maxval=1.5,
                                   dtype=jnp.float32)
        beta = 0.5 * jax.random.normal(k_b, (4 * dim,), dtype=jnp.float32)
        return x, gamma, beta, weight

    def check(x, gamma, beta, weight, out_dim, **kw):
        out = jax.block_until_ready(
            patch_merging2d(x, gamma, beta, weight, **kw))
        B, H, W, _ = x.shape
        Ho, Wo = (H + H % 2) // 2, (W + W % 2) // 2
        assert out.shape == (B, Ho, Wo, out_dim), out.shape
        ref = patch_merging2d_ref(x, gamma, beta, weight)
        out32 = out.astype(jnp.float32)
        err = float(jnp.max(jnp.abs(out32 - ref)))
        # bf16 MXU operands bound accuracy to ~1e-2 at these magnitudes.
        assert jnp.allclose(out32, ref, atol=4e-2, rtol=4e-2), err

    k1, k2, k3 = jax.random.split(root, 3)

    # 1) Small stage, out_dim < 128 -> padded lane-dense output path.
    x, g, b, w = make_case(k1, 2, 16, 16, 4, 8)
    check(x, g, b, w, 8)

    # 2) Odd spatial extent (F.pad semantics) + forced in-kernel sub-slab loop
    #    + float32 MXU escape hatch.
    x, g, b, w = make_case(k2, 2, 15, 15, 4, 8)
    check(x, g, b, w, 8, slab_tokens=16, mxu_dtype=jnp.float32)

    # 3) out_dim >= 128: native-width (unpadded) output writeback path.
    x, g, b, w = make_case(k3, 2, 8, 8, 96, 192)
    check(x, g, b, w, 192)

    print("KERNEL_OK")
</pallas_src>

<mosaic_0001>
module attributes {stable_mosaic.version = 11 : i64} {
  func.func @_patch_merge_kernel(%arg0: i32, %arg1: memref<8x2x8x8xf32, #tpu.memory_space<vmem>>, %arg2: memref<8x128xbf16, #tpu.memory_space<vmem>>, %arg3: memref<8x128xbf16, #tpu.memory_space<vmem>>, %arg4: memref<1x128xf32, #tpu.memory_space<vmem>>, %arg5: memref<8x8x128xf32, #tpu.memory_space<vmem>>) attributes {dimension_semantics = [#tpu.dimension_semantics<parallel>], iteration_bounds = array<i64: 2>, scalar_prefetch = 0 : i64, scratch_operands = 0 : i64, tpu.core_type = #tpu.core_type<tc>, window_params = [{transform_indices = @transform_0, window_bounds = array<i64: 8, 2, 8, 8>}, {pipeline_mode = #tpu.pipeline_mode<synchronous>, transform_indices = @transform_1, window_bounds = array<i64: 8, 128>}, {pipeline_mode = #tpu.pipeline_mode<synchronous>, transform_indices = @transform_2, window_bounds = array<i64: 8, 128>}, {pipeline_mode = #tpu.pipeline_mode<synchronous>, transform_indices = @transform_3, window_bounds = array<i64: 1, 128>}, {transform_indices = @transform_4, window_bounds = array<i64: 8, 8, 128>}]} {
    %c0 = arith.constant 0 : index
    %c0_0 = arith.constant 0 : index
    %0 = vector.load %arg2[%c0, %c0_0] : memref<8x128xbf16, #tpu.memory_space<vmem>>, vector<8x128xbf16>
    %c0_1 = arith.constant 0 : index
    %c0_2 = arith.constant 0 : index
    %1 = vector.load %arg3[%c0_1, %c0_2] : memref<8x128xbf16, #tpu.memory_space<vmem>>, vector<8x128xbf16>
    %c0_3 = arith.constant 0 : index
    %c0_4 = arith.constant 0 : index
    %2 = vector.load %arg4[%c0_3, %c0_4] : memref<1x128xf32, #tpu.memory_space<vmem>>, vector<1x128xf32>
    %c0_5 = arith.constant 0 : index
    %c0_6 = arith.constant 0 : index
    %c0_7 = arith.constant 0 : index
    %c0_8 = arith.constant 0 : index
    %3 = vector.load %arg1[%c0_5, %c0_6, %c0_7, %c0_8] : memref<8x2x8x8xf32, #tpu.memory_space<vmem>>, vector<8x2x8x8xf32>
    %4 = vector.extract_strided_slice %3 {offsets = [0, 0, 0, 0], sizes = [8, 1, 8, 8], strides = [1, 1, 1, 1]} : vector<8x2x8x8xf32> to vector<8x1x8x8xf32>
    %5 = vector.shape_cast %4 : vector<8x1x8x8xf32> to vector<8x8x8xf32>
    %6 = vector.extract_strided_slice %3 {offsets = [0, 1, 0, 0], sizes = [8, 1, 8, 8], strides = [1, 1, 1, 1]} : vector<8x2x8x8xf32> to vector<8x1x8x8xf32>
    %7 = vector.shape_cast %6 : vector<8x1x8x8xf32> to vector<8x8x8xf32>
    %cst = arith.constant dense<0.000000e+00> : vector<8x8xf32>
    %8 = vector.multi_reduction <add>, %5, %cst [2] : vector<8x8x8xf32> to vector<8x8xf32>
    %9 = vector.shape_cast %8 : vector<8x8xf32> to vector<8x8x1xf32>
    %cst_9 = arith.constant dense<0.000000e+00> : vector<8x8xf32>
    %10 = vector.multi_reduction <add>, %7, %cst_9 [2] : vector<8x8x8xf32> to vector<8x8xf32>
    %11 = vector.shape_cast %10 : vector<8x8xf32> to vector<8x8x1xf32>
    %12 = arith.addf %9, %11 : vector<8x8x1xf32>
    %cst_10 = arith.constant 6.250000e-02 : f32
    %13 = vector.broadcast %cst_10 : f32 to vector<8x8x1xf32>
    %14 = arith.mulf %12, %13 : vector<8x8x1xf32>
    %15 = vector.broadcast %14 : vector<8x8x1xf32> to vector<8x8x8xf32>
    %16 = arith.subf %5, %15 : vector<8x8x8xf32>
    %17 = vector.broadcast %14 : vector<8x8x1xf32> to vector<8x8x8xf32>
    %18 = arith.subf %7, %17 : vector<8x8x8xf32>
    %19 = arith.mulf %16, %16 : vector<8x8x8xf32>
    %cst_11 = arith.constant dense<0.000000e+00> : vector<8x8xf32>
    %20 = vector.multi_reduction <add>, %19, %cst_11 [2] : vector<8x8x8xf32> to vector<8x8xf32>
    %21 = vector.shape_cast %20 : vector<8x8xf32> to vector<8x8x1xf32>
    %22 = arith.mulf %18, %18 : vector<8x8x8xf32>
    %cst_12 = arith.constant dense<0.000000e+00> : vector<8x8xf32>
    %23 = vector.multi_reduction <add>, %22, %cst_12 [2] : vector<8x8x8xf32> to vector<8x8xf32>
    %24 = vector.shape_cast %23 : vector<8x8xf32> to vector<8x8x1xf32>
    %25 = arith.addf %21, %24 : vector<8x8x1xf32>
    %cst_13 = arith.constant 6.250000e-02 : f32
    %26 = vector.broadcast %cst_13 : f32 to vector<8x8x1xf32>
    %27 = arith.mulf %25, %26 : vector<8x8x1xf32>
    %cst_14 = arith.constant 9.99999974E-6 : f32
    %28 = vector.broadcast %cst_14 : f32 to vector<8x8x1xf32>
    %29 = arith.addf %27, %28 : vector<8x8x1xf32>
    %30 = math.rsqrt %29 : vector<8x8x1xf32>
    %31 = vector.broadcast %30 : vector<8x8x1xf32> to vector<8x8x8xf32>
    %32 = arith.mulf %16, %31 : vector<8x8x8xf32>
    %33 = vector.shape_cast %32 : vector<8x8x8xf32> to vector<64x8xf32>
    %34 = arith.truncf %33 : vector<64x8xf32> to vector<64x8xbf16>
    %35 = vector.broadcast %30 : vector<8x8x1xf32> to vector<8x8x8xf32>
    %36 = arith.mulf %18, %35 : vector<8x8x8xf32>
    %37 = vector.shape_cast %36 : vector<8x8x8xf32> to vector<64x8xf32>
    %38 = arith.truncf %37 : vector<64x8xf32> to vector<64x8xbf16>
    %cst_15 = arith.constant dense<0.000000e+00> : vector<64x128xf32>
    %39 = tpu.matmul %34, %0, %cst_15 {dimension_numbers = #tpu.dot_dimension_numbers<[1], [0], [0], [1], [0, 0, 1, 1], [], []>} : vector<64x8xbf16>, vector<8x128xbf16>, vector<64x128xf32> -> vector<64x128xf32>
    %cst_16 = arith.constant dense<0.000000e+00> : vector<64x128xf32>
    %40 = tpu.matmul %38, %1, %cst_16 {dimension_numbers = #tpu.dot_dimension_numbers<[1], [0], [0], [1], [0, 0, 1, 1], [], []>} : vector<64x8xbf16>, vector<8x128xbf16>, vector<64x128xf32> -> vector<64x128xf32>
    %41 = arith.addf %39, %40 : vector<64x128xf32>
    %42 = vector.broadcast %2 : vector<1x128xf32> to vector<64x128xf32>
    %43 = arith.addf %41, %42 : vector<64x128xf32>
    %44 = vector.shape_cast %43 : vector<64x128xf32> to vector<8x8x128xf32>
    %c0_17 = arith.constant 0 : index
    %c0_18 = arith.constant 0 : index
    %c0_19 = arith.constant 0 : index
    %45 = vector.load %arg5[%c0_17, %c0_18, %c0_19] : memref<8x8x128xf32, #tpu.memory_space<vmem>>, vector<8x8x128xf32>
    tpu.vector_store %arg5[%c0_17, %c0_18, %c0_19], %44 {strides = array<i32>} : memref<8x8x128xf32, #tpu.memory_space<vmem>>, vector<8x8x128xf32>,
    return
  }
  func.func @transform_0(%arg0: i32) -> (i32, i32, i32, i32) {
    %c0_i32 = arith.constant 0 : i32
    %c0_i32_0 = arith.constant 0 : i32
    %c0_i32_1 = arith.constant 0 : i32
    %c0_i32_2 = arith.constant 0 : i32
    return %arg0, %c0_i32, %c0_i32_0, %c0_i32_1 : i32, i32, i32, i32
  }
  func.func @transform_1(%arg0: i32) -> (i32, i32) {
    %c0_i32 = arith.constant 0 : i32
    %c0_i32_0 = arith.constant 0 : i32
    %c0_i32_1 = arith.constant 0 : i32
    return %c0_i32, %c0_i32_0 : i32, i32
  }
  func.func @transform_2(%arg0: i32) -> (i32, i32) {
    %c0_i32 = arith.constant 0 : i32
    %c0_i32_0 = arith.constant 0 : i32
    %c0_i32_1 = arith.constant 0 : i32
    return %c0_i32, %c0_i32_0 : i32, i32
  }
  func.func @transform_3(%arg0: i32) -> (i32, i32) {
    %c0_i32 = arith.constant 0 : i32
    %c0_i32_0 = arith.constant 0 : i32
    %c0_i32_1 = arith.constant 0 : i32
    return %c0_i32, %c0_i32_0 : i32, i32
  }
  func.func @transform_4(%arg0: i32) -> (i32, i32, i32) {
    %c0_i32 = arith.constant 0 : i32
    %c0_i32_0 = arith.constant 0 : i32
    %c0_i32_1 = arith.constant 0 : i32
    return %arg0, %c0_i32, %c0_i32_0 : i32, i32, i32
  }
}

</mosaic_0001>

<bundles_post_ra>
// kernel: tpu_custom_call.1
= control target key start
LH: loop header
LB: loop body
LE: loop exit
PB: predicated region body
PF: predicated region fallthrough
CT: control target
= control target key end

     0   :  { %9 = vsyncpa [#allocation3], 0  ;;  %s1196_s0 = inlined_call_operand.vmem [shape: f32[16,2,8,8], index: 0, kind: input, shape index: {}]   ;;  %s1197_s1 = inlined_call_operand.vmem [shape: bf16[8,128], index: 1, kind: input, shape index: {}]   ;;  %s1198_s2 = inlined_call_operand.vmem [shape: bf16[8,128], index: 2, kind: input, shape index: {}]   ;;  %s1199_s3 = inlined_call_operand.vmem [shape: f32[1,128], index: 3, kind: input, shape index: {}]   ;;  %s1200_s4 = inlined_call_operand.hbm [shape: f32[16,8,128], index: 4, kind: output, shape index: {}]  }
   0x1   :  { %11 = vsyncpa [#allocation3 + $0x1], 0  ;;  %s885_s15 = smov 0   ;;  %s887_s16 = smov 0  }
   0x2   :  { %s889_s17 = smov 0   ;;  %s891_s18 = smov 0  }
   0x3 LB: > { %s906_s19 = sadd.s32 4294967295, %s855_s18   ;;  %s682_s20 = sadd.s32 4294967294, %s855_s18   ;;  %s855_s18 = sphi %s891_s18, %s1206_s18   ;;  %s851_s17 = sphi %s889_s17, %s1205_s17   ;;  %s847_s16 = sphi %s887_s16, %s1204_s16   ;;  %s843_s15 = sphi %s885_s15, %s1203_s15  }
   0x4   : > { %s910_s21 = sadd.s32 1, %s855_s18   ;;  %s113_s22 = sadd.s32 1, %s851_s17 }
   0x5   : > { %s110_s23 = ssub.s32 %s855_s18, %s910_s21  ;;  %p123_p0 = scmp.ne.s32.totalorder %s851_s17, %s847_s16 }
   0x6   : > { %p111_p1 = scmp.eq.s32.totalorder %s110_s23, 0  ;;  %p124_p2 = scmp.eq.s32.totalorder %s906_s19, 1 }
   0x7   : > { %p129_p3 = scmp.ne.s32.totalorder %s847_s16, %s843_s15  ;;  %p130_p4 = scmp.eq.s32.totalorder %s682_s20, 1 }
   0x8   : > { %s921_s24 = scalar_select %p111_p1, %s851_s17, %s113_s22  }
   0x9   : > { %p923_p5 = por %p124_p2, %p123_p0  ;;  %p927_p6 = por %p130_p4, %p129_p3 }
   0xa   : > { %p685_p7 = scmp.ge.s32.totalorder %s855_s18, 1  ;;  %p167_p8 = scmp.lt.s32.totalorder %s855_s18, 3 }
   0xc   : > { %p168_p9 = pnand %p685_p7, %p167_p8 }
   0xd   : > { %s687_s27 = sshll.u32 (!%p168_p9), %s906_s19, 3  ;;  %s191_s10 = sand.u32 (!%p168_p9), 1, %s847_s16  }
   0xe   : > { %171 = sbr.rel (%p168_p9) target bundleno = 583 (0x247), region = 36  ;;  %p195_p10 = scmp.lt.s32.totalorder (!%p168_p9), %s687_s27, 15 }
   0xf   : > { %s686_s11 = sshll.u32 (!%p168_p9), %s191_s10, 6  ;;  %s705_s20 = sshll.u32 (!%p168_p9), %s906_s19, 10 }
  0x10   : > { %s1135_s14 = scalar_lea.vmem (!%p168_p9), [#allocation2], %s686_s11  ;;  %s1156_s19 = scalar_lea.sflag (!%p168_p9), [#allocation3], %s191_s10 }
  0x11   : > { %s620_s22 = sshll.u32 (!%p168_p9), %s1135_s14, 4  ;;  %s857_s30 = smov (!%p168_p9), [#allocation2]   ;;  %s1150_s22 = int_to_ptr.vmem [resolvable:$true] %s620_s22 }
  0x12   : > { %s795_s29 = scalar_lea.vmem (!%p168_p9), %s1150_s22, 1024 }
  0x13   : > { %s1208_s27 = smov (!%p195_p10, %s687_s27), 15  ;;  %vm222_vm0 = vcmask 64512   ;;  %vm435_vm1 = vcmask 1043456   ;;  %p796_p11 = scmp.ne.s32.totalorder %s1150_s22, %s795_s29 }
  0x14   : > { %s704_s28 = sshll.u32 %s1208_s27, 4 }
  0x15   : > { %s937_s5 = scalar_lea.vmem %s1196_s0, %s704_s28  ;;  %s1148_s28 = scalar_lea.hbm %s1200_s4, %s705_s20 }
  0x16   : > { %v207_v0 = vld [vmem:[%s937_s5 + $0x8] sm:$0xff]  ;;  %v206_v1 = vld [vmem:[%s937_s5] sm:$0xff]  ;;  %v209_v2 = vld [vmem:[%s937_s5 + $0x18] sm:$0xff]  ;;  %p797_p12 = pnand %p796_p11, %p923_p5 }
  0x17   : > { %v247_v3 = vsel %vm222_vm0, %v207_v0, 0.0  ;;  %v223_v4 = vsel %vm222_vm0, %v206_v1, 0.0  ;;  %v208_v5 = vld [vmem:[%s937_s5 + $0x10] sm:$0xff]  ;;  %v250_v6 = vsel %vm222_vm0, %v209_v2, 0.0  ;;  %v951_v9 = vld [vmem:[%s937_s5 + $0x20] sm:$0xff]  ;;  %v958_v12 = vld [vmem:[%s937_s5 + $0x38] sm:$0xff] }
  0x18   : > { %248 = vadd.xlane.f32.xlu1 %v247_v3  ;;  %224 = vadd.xlane.f32.xlu0 %v223_v4  ;;  %v226_v7 = vsel %vm222_vm0, %v208_v5, 0.0  ;;  %v948_v8 = vld [vmem:[%s937_s5 + $0x30] sm:$0xff]  ;;  %v229_v11 = vsel %vm222_vm0, %v951_v9, 0.0  ;;  %v961_v13 = vld [vmem:[%s937_s5 + $0x28] sm:$0xff]  ;;  %v256_v14 = vsel %vm222_vm0, %v958_v12, 0.0  ;;  %v971_v17 = vld [vmem:[%s937_s5 + $0x40] sm:$0xff]  ;;  %p798_p13 = pneg %p797_p12 }
  0x19   : > { %v232_v10 = vsel %vm222_vm0, %v948_v8, 0.0  ;;  %v253_v15 = vsel %vm222_vm0, %v961_v13, 0.0  ;;  %v968_v16 = vld [vmem:[%s937_s5 + $0x50] sm:$0xff]  ;;  %v235_v19 = vsel %vm222_vm0, %v971_v17, 0.0  ;;  %v978_v20 = vld [vmem:[%s937_s5 + $0x58] sm:$0xff]  ;;  %v981_v21 = vld [vmem:[%s937_s5 + $0x48] sm:$0xff] }
  0x1a   : > { %v238_v18 = vsel %vm222_vm0, %v968_v16, 0.0  ;;  %v262_v22 = vsel %vm222_vm0, %v978_v20, 0.0  ;;  %v259_v23 = vsel %vm222_vm0, %v981_v21, 0.0  ;;  %v988_v24 = vld [vmem:[%s937_s5 + $0x70] sm:$0xff]  ;;  %v991_v25 = vld [vmem:[%s937_s5 + $0x60] sm:$0xff]  ;;  %v998_v28 = vld [vmem:[%s937_s5 + $0x78] sm:$0xff] }
  0x1b   : > { %v244_v26 = vsel %vm222_vm0, %v988_v24, 0.0  ;;  %v241_v27 = vsel %vm222_vm0, %v991_v25, 0.0  ;;  %v1001_v29 = vld [vmem:[%s937_s5 + $0x68] sm:$0xff]  ;;  %v268_v30 = vsel %vm222_vm0, %v998_v28, 0.0  ;;  %s799_s5 = sshll.u32 %s857_s30, 4  ;;  %s800_s5 = int_to_ptr.vmem [resolvable:$false] %s799_s5 }
  0x1c   : > { %251 = vadd.xlane.f32.xlu1 %v250_v6  ;;  %227 = vadd.xlane.f32.xlu0 %v226_v7  ;;  %v265_v31 = vsel %vm222_vm0, %v1001_v29, 0.0  ;;  %s801_s6 = scalar_lea.vmem %s800_s5, 2048  ;;  %p802_p0 = scmp.lt.s32.totalorder %s1150_s22, %s800_s5 }
  0x1d   : > { %p803_p1 = scmp.lt.s32.totalorder %s801_s6, %s795_s29 }
  0x1f   : > { %p804_p2 = por %p803_p1, %p802_p0 }
  0x20   : > { %233 = vadd.xlane.f32.xlu1 %v232_v10  ;;  %230 = vadd.xlane.f32.xlu0 %v229_v11 }
  0x21   : > { %p805_p3 = pnand %p804_p2, %p798_p13 }
  0x24   : > { %257 = vadd.xlane.f32.xlu1 %v256_v14  ;;  %254 = vadd.xlane.f32.xlu0 %v253_v15 }
  0x28   : > { %239 = vadd.xlane.f32.xlu1 %v238_v18  ;;  %236 = vadd.xlane.f32.xlu0 %v235_v19 }
  0x2c   : > { %263 = vadd.xlane.f32.xlu1 %v262_v22  ;;  %260 = vadd.xlane.f32.xlu0 %v259_v23 }
  0x30   : > { %245 = vadd.xlane.f32.xlu1 %v244_v26  ;;  %242 = vadd.xlane.f32.xlu0 %v241_v27 }
  0x34   : > { %269 = vadd.xlane.f32.xlu1 %v268_v30  ;;  %266 = vadd.xlane.f32.xlu0 %v265_v31 }
  0xa1   : > { %v249_v32 = vpop.xlane.xlu1 %248  ;;  %v225_v33 = vpop.xlane.xlu0 %224 }
  0xa2   : > { %v271_v34 = vadd.f32 %v249_v32, %v225_v33 }
  0xa4   : > { %v279_v35 = vmul.f32 0.0625, %v271_v34 }
  0xa5   : > { %v252_v36 = vpop.xlane.xlu1 %251  ;;  %v228_v37 = vpop.xlane.xlu0 %227 }
  0xa6   : > { %v1007_v38 = vsub.f32 %v206_v1, %v279_v35  ;;  %v1009_v39 = vsub.f32 %v207_v0, %v279_v35  ;;  %v272_v40 = vadd.f32 %v252_v36, %v228_v37 }
  0xa8   : > { %v280_v41 = vmul.f32 0.0625, %v272_v40  ;;  %v303_v42 = vmul.f32 %v1007_v38, %v1007_v38  ;;  %v335_v48 = vmul.f32 %v1009_v39, %v1009_v39 }
  0xa9   : > { %v234_v43 = vpop.xlane.xlu1 %233  ;;  %v231_v44 = vpop.xlane.xlu0 %230 }
  0xaa   : > { %v1013_v45 = vsub.f32 %v208_v5, %v280_v41  ;;  %v1015_v46 = vsub.f32 %v209_v2, %v280_v41  ;;  %v311_v47 = vsel %vm222_vm0, %v303_v42, 0.0  ;;  %v343_v55 = vsel %vm222_vm0, %v335_v48, 0.0 }
  0xab   : > { %312 = vadd.xlane.f32.xlu0 %v311_v47 }
  0xac   : > { %v304_v49 = vmul.f32 %v1013_v45, %v1013_v45  ;;  %v336_v52 = vmul.f32 %v1015_v46, %v1015_v46 }
  0xad   : > { %v258_v50 = vpop.xlane.xlu1 %257  ;;  %v255_v51 = vpop.xlane.xlu0 %254 }
  0xae   : > { %v274_v53 = vadd.f32 %v258_v50, %v234_v43  ;;  %v273_v54 = vadd.f32 %v255_v51, %v231_v44  ;;  %v314_v56 = vsel %vm222_vm0, %v304_v49, 0.0  ;;  %v346_v61 = vsel %vm222_vm0, %v336_v52, 0.0  ;;  %v204_v52 = vld [vmem:[%s1198_s2] sm:$0xf] }
  0xaf   : > { %344 = vadd.xlane.f32.xlu0 %v343_v55  ;;  %315 = vadd.xlane.f32.xlu1 %v314_v56 }
  0xb0   : > { %v282_v57 = vmul.f32 0.0625, %v274_v53  ;;  %v281_v58 = vmul.f32 0.0625, %v273_v54  ;;  %v203_v53 = vld [vmem:[%s1197_s1] sm:$0xf]  ;;  %736 = vmatprep.subr.msk.bf16.mxu0 %vm435_vm1, %v204_v52  ;;  %v437_v54 = vsel %vm435_vm1, %v204_v52, 0 }
  0xb1   : > { %v240_v59 = vpop.xlane.xlu1 %239  ;;  %v237_v60 = vpop.xlane.xlu0 %236  ;;  %737 = vmatprep.subr.msk.bf16.mxu1 %vm435_vm1, %v203_v53  ;;  %v517_v55 = vsel %vm435_vm1, %v203_v53, 0  ;;  %717 = vmatpush3.bf16.msra.mxu0 %v437_v54 }
  0xb2   : > { %v1028_v62 = vsub.f32 %v948_v8, %v282_v57  ;;  %v1031_v63 = vsub.f32 %v958_v12, %v282_v57  ;;  %v1034_v0 = vsub.f32 %v951_v9, %v281_v58  ;;  %v1037_v1 = vsub.f32 %v961_v13, %v281_v58  ;;  %727 = vmatpush3.bf16.msra.mxu1 %v517_v55 }
  0xb3   : > { %347 = vadd.xlane.f32.xlu1 %v346_v61 }
  0xb4   : > { %v306_v2 = vmul.f32 %v1028_v62, %v1028_v62  ;;  %v305_v3 = vmul.f32 %v1034_v0, %v1034_v0  ;;  %v338_v6 = vmul.f32 %v1031_v63, %v1031_v63  ;;  %v337_v7 = vmul.f32 %v1037_v1, %v1037_v1 }
  0xb5   : > { %v264_v4 = vpop.xlane.xlu1 %263  ;;  %v261_v5 = vpop.xlane.xlu0 %260 }
  0xb6   : > { %v276_v8 = vadd.f32 %v264_v4, %v240_v59  ;;  %v275_v9 = vadd.f32 %v261_v5, %v237_v60  ;;  %v320_v10 = vsel %vm222_vm0, %v306_v2, 0.0  ;;  %v317_v11 = vsel %vm222_vm0, %v305_v3, 0.0 }
  0xb7   : > { %321 = vadd.xlane.f32.xlu1 %v320_v10  ;;  %318 = vadd.xlane.f32.xlu0 %v317_v11  ;;  %v352_v18 = vsel %vm222_vm0, %v338_v6, 0.0  ;;  %v349_v19 = vsel %vm222_vm0, %v337_v7, 0.0 }
  0xb8   : > { %v284_v12 = vmul.f32 0.0625, %v276_v8  ;;  %v283_v13 = vmul.f32 0.0625, %v275_v9 }
  0xb9   : > { %v246_v14 = vpop.xlane.xlu1 %245  ;;  %v243_v15 = vpop.xlane.xlu0 %242 }
  0xba   : > { %v1052_v22 = vsub.f32 %v968_v16, %v284_v12  ;;  %v1055_v23 = vsub.f32 %v978_v20, %v284_v12  ;;  %v1058_v26 = vsub.f32 %v971_v17, %v283_v13  ;;  %v1061_v27 = vsub.f32 %v981_v21, %v283_v13 }
  0xbb   : > { %353 = vadd.xlane.f32.xlu1 %v352_v18  ;;  %350 = vadd.xlane.f32.xlu0 %v349_v19 }
  0xbc   : > { %v308_v30 = vmul.f32 %v1052_v22, %v1052_v22  ;;  %v307_v31 = vmul.f32 %v1058_v26, %v1058_v26  ;;  %v340_v20 = vmul.f32 %v1055_v23, %v1055_v23  ;;  %v339_v17 = vmul.f32 %v1061_v27, %v1061_v27 }
  0xbd   : > { %v270_v32 = vpop.xlane.xlu1 %269  ;;  %v267_v16 = vpop.xlane.xlu0 %266 }
  0xbe   : > { %v278_v33 = vadd.f32 %v270_v32, %v246_v14  ;;  %v277_v34 = vadd.f32 %v267_v16, %v243_v15  ;;  %v326_v21 = vsel %vm222_vm0, %v308_v30, 0.0  ;;  %v323_v35 = vsel %vm222_vm0, %v307_v31, 0.0 }
  0xbf   : > { %327 = vadd.xlane.f32.xlu1 %v326_v21  ;;  %324 = vadd.xlane.f32.xlu0 %v323_v35  ;;  %v358_v40 = vsel %vm222_vm0, %v340_v20, 0.0  ;;  %v355_v41 = vsel %vm222_vm0, %v339_v17, 0.0 }
  0xc0   : > { %v286_v36 = vmul.f32 0.0625, %v278_v33  ;;  %v285_v37 = vmul.f32 0.0625, %v277_v34 }
  0xc2   : > { %v1076_v42 = vsub.f32 %v988_v24, %v286_v36  ;;  %v1079_v43 = vsub.f32 %v998_v28, %v286_v36  ;;  %v1082_v44 = vsub.f32 %v991_v25, %v285_v37  ;;  %v1085_v47 = vsub.f32 %v1001_v29, %v285_v37 }
  0xc3   : > { %359 = vadd.xlane.f32.xlu1 %v358_v40  ;;  %356 = vadd.xlane.f32.xlu0 %v355_v41 }
  0xc4   : > { %v310_v48 = vmul.f32 %v1076_v42, %v1076_v42  ;;  %v309_v49 = vmul.f32 %v1082_v44, %v1082_v44  ;;  %v342_v28 = vmul.f32 %v1079_v43, %v1079_v43  ;;  %v341_v25 = vmul.f32 %v1085_v47, %v1085_v47 }
  0xc6   : > { %v332_v24 = vsel %vm222_vm0, %v310_v48, 0.0  ;;  %v329_v50 = vsel %vm222_vm0, %v309_v49, 0.0  ;;  %v364_v29 = vsel %vm222_vm0, %v342_v28, 0.0  ;;  %v361_v51 = vsel %vm222_vm0, %v341_v25, 0.0 }
  0xc7   : > { %333 = vadd.xlane.f32.xlu1 %v332_v24  ;;  %330 = vadd.xlane.f32.xlu0 %v329_v50 }
  0xcb   : > { %365 = vadd.xlane.f32.xlu1 %v364_v29  ;;  %362 = vadd.xlane.f32.xlu0 %v361_v51 }
 0x134   : > { %v313_v56 = vpop.xlane.xlu0 %312 }
 0x138   : > { %v316_v57 = vpop.xlane.xlu1 %315  ;;  %v345_v58 = vpop.xlane.xlu0 %344 }
 0x139   : > { %v367_v59 = vadd.f32 %v345_v58, %v313_v56 }
 0x13b   : > { %v375_v60 = vmul.f32 0.0625, %v367_v59 }
 0x13c   : > { %v348_v61 = vpop.xlane.xlu1 %347 }
 0x13d   : > { %v383_v2 = vadd.f32 1e-05, %v375_v60  ;;  %v368_v3 = vadd.f32 %v348_v61, %v316_v57 }
 0x13f   : > { %v376_v4 = vmul.f32 0.0625, %v368_v3  ;;  %779 = vrsqrt.f32 %v383_v2 }
 0x140   : > { %v322_v5 = vpop.xlane.xlu1 %321  ;;  %v319_v6 = vpop.xlane.xlu0 %318 }
 0x141   : > { %v384_v7 = vadd.f32 1e-05, %v376_v4 }
 0x143   : > { %781 = vrsqrt.f32 %v384_v7 }
 0x144   : > { %v354_v8 = vpop.xlane.xlu1 %353  ;;  %v351_v9 = vpop.xlane.xlu0 %350 }
 0x145   : > { %v370_v10 = vadd.f32 %v354_v8, %v322_v5  ;;  %v369_v11 = vadd.f32 %v351_v9, %v319_v6 }
 0x147   : > { %v378_v12 = vmul.f32 0.0625, %v370_v10  ;;  %v377_v13 = vmul.f32 0.0625, %v369_v11 }
 0x148   : > { %v328_v14 = vpop.xlane.xlu1 %327  ;;  %v325_v15 = vpop.xlane.xlu0 %324 }
 0x149   : > { %v386_v18 = vadd.f32 1e-05, %v378_v12  ;;  %v385_v19 = vadd.f32 1e-05, %v377_v13 }
 0x14b   : > { %783 = vrsqrt.f32 %v386_v18 }
 0x14c   : > { %785 = vrsqrt.f32 %v385_v19  ;;  %v360_v30 = vpop.xlane.xlu1 %359  ;;  %v357_v31 = vpop.xlane.xlu0 %356 }
 0x14d   : > { %v780_v32 = vpop.eup %779  ;;  %v372_v16 = vadd.f32 %v360_v30, %v328_v14  ;;  %v371_v20 = vadd.f32 %v357_v31, %v325_v15 }
 0x14e   : > { %v411_v36 = vmul.f32 %v780_v32, %v1009_v39  ;;  %v399_v37 = vmul.f32 %v780_v32, %v1007_v38 }
 0x14f   : > { %v380_v17 = vmul.f32 0.0625, %v372_v16  ;;  %v379_v33 = vmul.f32 0.0625, %v371_v20 }
 0x150   : > { %v782_v34 = vpop.eup %781  ;;  %v334_v21 = vpop.xlane.xlu1 %333 }
 0x151   : > { %v331_v35 = vpop.xlane.xlu0 %330  ;;  %v388_v40 = vadd.f32 1e-05, %v380_v17  ;;  %v387_v41 = vadd.f32 1e-05, %v379_v33  ;;  %v412_v48 = vmul.f32 %v782_v34, %v1015_v46  ;;  %v400_v49 = vmul.f32 %v782_v34, %v1013_v45 }
 0x153   : > { %787 = vrsqrt.f32 %v388_v40  ;;  %v419_v24 = vpack.c.bf16 %v412_v48, %v411_v36  ;;  %v407_v50 = vpack.c.bf16 %v400_v49, %v399_v37 }
 0x154   : > { %789 = vrsqrt.f32 %v387_v41  ;;  %v366_v28 = vpop.xlane.xlu1 %365 }
 0x155   : > { %v363_v25 = vpop.xlane.xlu0 %362  ;;  %v374_v29 = vadd.f32 %v366_v28, %v334_v21  ;;  %718 = vmatprep.mubr.msk.bf16.mxu0 %vm222_vm0, %v419_v24  ;;  %728 = vmatprep.mubr.msk.bf16.mxu1 %vm222_vm0, %v407_v50 }
 0x156   : > { %v373_v51 = vadd.f32 %v363_v25, %v331_v35 }
 0x157   : > { %v382_v39 = vmul.f32 0.0625, %v374_v29 }
 0x158   : > { %v381_v38 = vmul.f32 0.0625, %v373_v51  ;;  %v784_v52 = vpop.eup %783 }
 0x159   : > { %v786_v53 = vpop.eup %785  ;;  %v390_v54 = vadd.f32 1e-05, %v382_v39  ;;  %v414_v45 = vmul.f32 %v784_v52, %v1031_v63  ;;  %v402_v55 = vmul.f32 %v784_v52, %v1028_v62 }
 0x15a   : > { %v389_v46 = vadd.f32 1e-05, %v381_v38  ;;  %v413_v56 = vmul.f32 %v786_v53, %v1037_v1  ;;  %v401_v57 = vmul.f32 %v786_v53, %v1034_v0 }
 0x15b   : > { %791 = vrsqrt.f32 %v390_v54 }
 0x15c   : > { %793 = vrsqrt.f32 %v389_v46  ;;  %v420_v58 = vpack.c.bf16 %v414_v45, %v413_v56  ;;  %v408_v59 = vpack.c.bf16 %v402_v55, %v401_v57 }
 0x15e   : > { %719 = vmatmul.mubr.msk.bf16.vlgmr.msra.gmra.mxu0 %vm222_vm0, %v420_v58  ;;  %729 = vmatmul.mubr.msk.bf16.vlgmr.msra.gmra.mxu1 %vm222_vm0, %v408_v59 }
 0x160   : > { %v788_v60 = vpop.eup %787 }
 0x161   : > { %v790_v61 = vpop.eup %789  ;;  %v416_v2 = vmul.f32 %v788_v60, %v1055_v23  ;;  %v404_v63 = vmul.f32 %v788_v60, %v1052_v22 }
 0x162   : > { %v415_v62 = vmul.f32 %v790_v61, %v1061_v27  ;;  %v403_v1 = vmul.f32 %v790_v61, %v1058_v26 }
 0x164   : > { %v421_v0 = vpack.c.bf16 %v416_v2, %v415_v62  ;;  %v409_v3 = vpack.c.bf16 %v404_v63, %v403_v1 }
 0x166   : > { %722 = vmatprep.mubr.msk.bf16.mxu0 %vm222_vm0, %v421_v0  ;;  %732 = vmatprep.mubr.msk.bf16.mxu1 %vm222_vm0, %v409_v3 }
 0x168   : > { %v792_v4 = vpop.eup %791 }
 0x169   : > { %v794_v5 = vpop.eup %793  ;;  %v418_v6 = vmul.f32 %v792_v4, %v1079_v43  ;;  %v406_v23 = vmul.f32 %v792_v4, %v1076_v42  ;;  %v698_v43 = vld [vmem:[%s1199_s3] ss:$0 sm:$0xff] }
 0x16a   : > { %v417_v22 = vmul.f32 %v794_v5, %v1085_v47  ;;  %v405_v27 = vmul.f32 %v794_v5, %v1082_v44 }
 0x16c   : > { %v422_v7 = vpack.c.bf16 %v418_v6, %v417_v22  ;;  %v410_v8 = vpack.c.bf16 %v406_v23, %v405_v27 }
 0x16e   : > { %723 = vmatmul.mubr.msk.bf16.gmra.mxu0 %vm222_vm0, %v422_v7  ;;  %733 = vmatmul.mubr.msk.bf16.gmra.mxu1 %vm222_vm0, %v410_v8 }
 0x21e   : > { %v720_v26 = vpop.f32.mrf.mxu0  ;;  %v730_v9 = vpop.f32.mrf.mxu1 }
 0x21f   : > { %v562_v42 = vadd.f32 %v730_v9, %v720_v26 }
 0x220   : > { %v473_v10 = vpop.f32.mrf.mxu0  ;;  %v553_v47 = vpop.f32.mrf.mxu1 }
 0x221   : > { %v592_v11 = vadd.f32 %v698_v43, %v562_v42  ;;  %v554_v44 = vadd.f32 %v553_v47, %v473_v10 }
 0x222   : > { %v721_v12 = vpop.f32.mrf.mxu0  ;;  %v731_v13 = vpop.f32.mrf.mxu1 }
 0x223   : > { %600 = vst [vmem:[%s1135_s14 + $0x10] sm:$0xff] %v592_v11  ;;  %v590_v14 = vadd.f32 %v698_v43, %v554_v44  ;;  %v565_v15 = vadd.f32 %v731_v13, %v721_v12 }
 0x224   : > { %v476_v18 = vpop.f32.mrf.mxu0  ;;  %v556_v19 = vpop.f32.mrf.mxu1 }
 0x225   : > { %598 = vst [vmem:[%s1135_s14] sm:$0xff] %v590_v14  ;;  %v593_v30 = vadd.f32 %v698_v43, %v565_v15  ;;  %v557_v31 = vadd.f32 %v556_v19, %v476_v18 }
 0x227   : > { %601 = vst [vmem:[%s1135_s14 + $0x18] sm:$0xff] %v593_v30  ;;  %v591_v32 = vadd.f32 %v698_v43, %v557_v31 }
 0x229   : > { %599 = vst [vmem:[%s1135_s14 + $0x8] sm:$0xff] %v591_v32 }
 0x22e   : > { %v724_v16 = vpop.f32.mrf.mxu0  ;;  %v734_v20 = vpop.f32.mrf.mxu1 }
 0x22f   : > { %v578_v17 = vadd.f32 %v734_v20, %v724_v16 }
 0x230   : > { %v489_v33 = vpop.f32.mrf.mxu0  ;;  %v569_v34 = vpop.f32.mrf.mxu1 }
 0x231   : > { %v596_v21 = vadd.f32 %v698_v43, %v578_v17  ;;  %v570_v35 = vadd.f32 %v569_v34, %v489_v33 }
 0x232   : > { %v725_v36 = vpop.f32.mrf.mxu0  ;;  %v735_v37 = vpop.f32.mrf.mxu1 }
 0x233   : > { %604 = vst [vmem:[%s1135_s14 + $0x30] sm:$0xff] %v596_v21  ;;  %v594_v40 = vadd.f32 %v698_v43, %v570_v35  ;;  %v581_v41 = vadd.f32 %v735_v37, %v725_v36 }
 0x234   : > { %v492_v48 = vpop.f32.mrf.mxu0  ;;  %v572_v49 = vpop.f32.mrf.mxu1 }
 0x235   : > { %602 = vst [vmem:[%s1135_s14 + $0x20] sm:$0xff] %v594_v40  ;;  %v597_v24 = vadd.f32 %v698_v43, %v581_v41  ;;  %v573_v50 = vadd.f32 %v572_v49, %v492_v48 }
 0x237   : > { %605 = vst [vmem:[%s1135_s14 + $0x38] sm:$0xff] %v597_v24  ;;  %v595_v28 = vadd.f32 %v698_v43, %v573_v50 }
 0x239   : > { %603 = vst [vmem:[%s1135_s14 + $0x28] sm:$0xff] %v595_v28 }
 0x23a   : > { %808 = shalt.err (!%p805_p3)
}
 0x23b   : > { %s809_s7 = scalar_lea.hbm %s1148_s28, 1024  ;;  %s813_s10 = scalar_lea.hbm %s1200_s4, 2048 }
 0x23c   : > { %p810_p4 = scmp.ne.s32.totalorder %s1148_s28, %s809_s7  ;;  %p814_p9 = scmp.lt.s32.totalorder %s1148_s28, %s1200_s4 }
 0x23d   : > { %p815_p10 = scmp.lt.s32.totalorder %s813_s10, %s809_s7 }
 0x23e   : > { %p811_p7 = pnand %p810_p4, %p923_p5 }
 0x23f   : > { %p816_p11 = por %p815_p10, %p814_p9 }
 0x240   : > { %p812_p8 = pneg %p811_p7 }
 0x242   : > { %p817_p12 = pnand %p816_p11, %p812_p8 }
 0x244   : > { %820 = shalt.err (!%p817_p12)
}
 0x245   : > { %s858_s13 = smov 128   ;;  %s859_s14 = smov 8  }
 0x246   : > { %738 = dma.vmem_to_hbm [thread:$0]  (%p923_p5), %s1150_s22, 1024, %s1148_s28, %s1156_s19, %s858_s13, %s858_s13, %s859_s14  }
 0x247 PF: > { %p744_p13 = scmp.ge.s32.totalorder %s855_s18, 2  ;;  %s635_s20 = sand.u32 1, %s843_s15  }
 0x248   : > { %s636_s23 = scalar_lea.sflag [#allocation3], %s635_s20 }
 0x249   : > { %p741_p0 = pnand %p744_p13, %p927_p6 }
 0x24b   : > { %p742_p1 = pneg %p741_p0 }
 0x24d   : > { %838 = dma.done.wait (%p742_p1), %s636_s23, 1024  }
 0x24e   : > { %840 = vsyncadd (%p742_p1), %s636_s23, 4294966272  ;;  %p14_p2 = scmp.ge.s32.totalorder %s910_s21, 4   ;;  %s1203_s15 = smov %s847_s16 }
 0x24f   : > { %s1204_s16 = smov %s851_s17  ;;  %s1205_s17 = smov %s921_s24 }
 0x250   : > { %s1206_s18 = smov %s910_s21  ;;  %16 = sbr.rel (!%p14_p2) target bundleno = 3 (0x3), region = 71 }
 0x255   :  { %641 = vsyncpa [#allocation3], 1 }
 0x256   :  { %643 = vsyncpa [#allocation3 + $0x1], 1 }

</bundles_post_ra>
